<compile_context>
chip_gen: v5e
topology: v5e:2x2
jax: 0.10.0
libtpu: 0.0.40
codegen_flags: <defaults>
</compile_context>

<pallas_src>
import functools

import jax
import jax.numpy as jnp
from jax.experimental import pallas as pl
from jax.experimental.pallas import tpu as pltpu


def _round_up(x, m):
    return (x + m - 1) // m * m


def _node_cls_kernel(x_ref, w1_ref, b1_ref, w2_ref, pk_ref, o_ref, *,
                     c_true, eps):
    # x_ref:  (tile_n, in_pad)  f32
    # w1_ref: (in_pad, h_pad)   bf16
    # b1_ref: (1, h_pad)        f32
    # w2_ref: (h_pad, c_pad)    bf16
    # pk_ref: (3, c_pad)        f32   rows: [b2, gamma, beta]
    # o_ref:  (tile_n, c_pad)   f32
    x = x_ref[...].astype(jnp.bfloat16)

    # Linear 1 (bf16 MXU, f32 accumulate) + bias + ReLU (f32 VPU)
    h = jnp.dot(x, w1_ref[...], preferred_element_type=jnp.float32) + b1_ref[...]
    h = jnp.maximum(h, 0.0).astype(jnp.bfloat16)

    # Linear 2 (bf16 MXU, f32 accumulate) + bias
    z = jnp.dot(h, w2_ref[...], preferred_element_type=jnp.float32) + pk_ref[0:1, :]

    # LayerNorm over the TRUE class dimension (first c_true lanes only).
    inv_c = 1.0 / float(c_true)
    mask = jax.lax.broadcasted_iota(jnp.int32, z.shape, 1) < c_true
    mean = jnp.sum(jnp.where(mask, z, 0.0), axis=-1, keepdims=True) * inv_c
    cent = jnp.where(mask, z - mean, 0.0)
    var = jnp.sum(cent * cent, axis=-1, keepdims=True) * inv_c
    zn = cent * jax.lax.rsqrt(var + eps)

    o_ref[...] = (zn * pk_ref[1:2, :] + pk_ref[2:3, :]).astype(o_ref.dtype)


def node_cls_forward(x, w1, b1, w2, b2, gamma, beta, *, tile_n=512, eps=1e-5):
    """Fused Linear->ReLU->Linear->LayerNorm.

    x:  (N, in_dim) float32
    w1: (in_dim, h_dim)   b1: (h_dim,)    (already transposed vs. torch weight)
    w2: (h_dim, c_dim)    b2: (c_dim,)
    gamma, beta: (c_dim,)
    returns (N, c_dim) float32
    """
    n, in_dim = x.shape
    h_dim = w1.shape[1]
    c_dim = w2.shape[1]

    # Pad feature dims so MXU K/N dims are full and output is lane-dense.
    in_pad = _round_up(in_dim, 128)
    h_pad = _round_up(h_dim, 128)
    c_pad = _round_up(c_dim, 128)

    # Pick a large row tile (multiple of 8 sublanes); no divisibility assert —
    # pad N up to a multiple of the tile and slice the valid rows afterwards.
    tn = min(tile_n, _round_up(n, 8))
    n_pad = _round_up(n, tn)
    grid = n_pad // tn

    # Zero-padded operands. Padded K/N columns are exact zeros, so they do not
    # perturb the matmul results; padded class lanes are masked out of the LN.
    x_p = jnp.zeros((n_pad, in_pad), jnp.float32).at[:n, :in_dim].set(
        x.astype(jnp.float32))
    w1_p = jnp.zeros((in_pad, h_pad), jnp.bfloat16).at[:in_dim, :h_dim].set(
        w1.astype(jnp.bfloat16))
    b1_p = jnp.zeros((1, h_pad), jnp.float32).at[0, :h_dim].set(b1)
    w2_p = jnp.zeros((h_pad, c_pad), jnp.bfloat16).at[:h_dim, :c_dim].set(
        w2.astype(jnp.bfloat16))
    packed = (jnp.zeros((3, c_pad), jnp.float32)
              .at[0, :c_dim].set(b2)
              .at[1, :c_dim].set(gamma)
              .at[2, :c_dim].set(beta))

    kernel = functools.partial(_node_cls_kernel, c_true=c_dim, eps=eps)

    out_padded = pl.pallas_call(
        kernel,
        out_shape=jax.ShapeDtypeStruct((n_pad, c_pad), jnp.float32),
        grid_spec=pltpu.PrefetchScalarGridSpec(
            num_scalar_prefetch=0,
            grid=(grid,),
            in_specs=[
                pl.BlockSpec((tn, in_pad), lambda i: (i, 0)),      # x row tile
                pl.BlockSpec((in_pad, h_pad), lambda i: (0, 0)),   # W1 (full)
                pl.BlockSpec((1, h_pad), lambda i: (0, 0)),        # b1
                pl.BlockSpec((h_pad, c_pad), lambda i: (0, 0)),    # W2 (full)
                pl.BlockSpec((3, c_pad), lambda i: (0, 0)),        # [b2,gamma,beta]
            ],
            out_specs=pl.BlockSpec((tn, c_pad), lambda i: (i, 0)),
        ),
        compiler_params=pltpu.CompilerParams(
            dimension_semantics=("parallel",)),
    )(x_p, w1_p, b1_p, w2_p, packed)

    return out_padded[:n, :c_dim]


def _reference(x, w1, b1, w2, b2, gamma, beta, eps=1e-5):
    # Mirrors the kernel's bf16-operand / f32-accumulate matmuls.
    h = jnp.dot(x.astype(jnp.bfloat16), w1.astype(jnp.bfloat16),
                preferred_element_type=jnp.float32) + b1
    h = jnp.maximum(h, 0.0)
    z = jnp.dot(h.astype(jnp.bfloat16), w2.astype(jnp.bfloat16),
                preferred_element_type=jnp.float32) + b2
    mean = jnp.mean(z, axis=-1, keepdims=True)
    var = jnp.mean((z - mean) ** 2, axis=-1, keepdims=True)
    return (z - mean) * jax.lax.rsqrt(var + eps) * gamma + beta


if __name__ == "__main__":
    # Small shapes: n = number of nodes (GNN output rows),
    # in_dim = h_dim = args.hidden_channels, c_dim = number of classes.
    # n deliberately NOT a multiple of the tile size to exercise padding.
    n, in_dim, h_dim, c_dim = 100, 32, 32, 4

    key = jax.random.PRNGKey(0)
    kx, kw1, kb1, kw2, kb2 = jax.random.split(key, 5)

    # Deterministic init mirroring nn.Linear's U(-1/sqrt(fan_in), 1/sqrt(fan_in))
    x = jax.random.normal(kx, (n, in_dim), dtype=jnp.float32)

    k1 = 1.0 / (in_dim ** 0.5)
    w1 = jax.random.uniform(kw1, (in_dim, h_dim), jnp.float32, -k1, k1)
    b1 = jax.random.uniform(kb1, (h_dim,), jnp.float32, -k1, k1)

    k2 = 1.0 / (h_dim ** 0.5)
    w2 = jax.random.uniform(kw2, (h_dim, c_dim), jnp.float32, -k2, k2)
    b2 = jax.random.uniform(kb2, (c_dim,), jnp.float32, -k2, k2)

    gamma = jnp.ones((c_dim,), jnp.float32)   # LayerNorm weight
    beta = jnp.zeros((c_dim,), jnp.float32)   # LayerNorm bias

    out = node_cls_forward(x, w1, b1, w2, b2, gamma, beta)
    out = jax.block_until_ready(out)

    ref = _reference(x, w1, b1, w2, b2, gamma, beta)
    assert out.shape == (n, c_dim)
    assert jnp.allclose(out, ref, atol=1e-4, rtol=1e-4), "mismatch vs reference"

    print("KERNEL_OK")
</pallas_src>

<mosaic_0001>
module attributes {stable_mosaic.version = 11 : i64} {
  func.func @_node_cls_kernel(%arg0: i32, %arg1: memref<104x128xf32, #tpu.memory_space<vmem>>, %arg2: memref<128x128xbf16, #tpu.memory_space<vmem>>, %arg3: memref<1x128xf32, #tpu.memory_space<vmem>>, %arg4: memref<128x128xbf16, #tpu.memory_space<vmem>>, %arg5: memref<3x128xf32, #tpu.memory_space<vmem>>, %arg6: memref<104x128xf32, #tpu.memory_space<vmem>>) attributes {dimension_semantics = [#tpu.dimension_semantics<parallel>], iteration_bounds = array<i64: 1>, scalar_prefetch = 0 : i64, scratch_operands = 0 : i64, tpu.core_type = #tpu.core_type<tc>, window_params = [{transform_indices = @transform_0, window_bounds = array<i64: 104, 128>}, {pipeline_mode = #tpu.pipeline_mode<synchronous>, transform_indices = @transform_1, window_bounds = array<i64: 128, 128>}, {pipeline_mode = #tpu.pipeline_mode<synchronous>, transform_indices = @transform_2, window_bounds = array<i64: 1, 128>}, {pipeline_mode = #tpu.pipeline_mode<synchronous>, transform_indices = @transform_3, window_bounds = array<i64: 128, 128>}, {pipeline_mode = #tpu.pipeline_mode<synchronous>, transform_indices = @transform_4, window_bounds = array<i64: 3, 128>}, {transform_indices = @transform_5, window_bounds = array<i64: 104, 128>}]} {
    %c0 = arith.constant 0 : index
    %c0_0 = arith.constant 0 : index
    %0 = vector.load %arg1[%c0, %c0_0] : memref<104x128xf32, #tpu.memory_space<vmem>>, vector<104x128xf32>
    %1 = arith.truncf %0 : vector<104x128xf32> to vector<104x128xbf16>
    %c0_1 = arith.constant 0 : index
    %c0_2 = arith.constant 0 : index
    %2 = vector.load %arg2[%c0_1, %c0_2] : memref<128x128xbf16, #tpu.memory_space<vmem>>, vector<128x128xbf16>
    %cst = arith.constant dense<0.000000e+00> : vector<104x128xf32>
    %3 = tpu.matmul %1, %2, %cst {dimension_numbers = #tpu.dot_dimension_numbers<[1], [0], [0], [1], [0, 0, 1, 1], [], []>} : vector<104x128xbf16>, vector<128x128xbf16>, vector<104x128xf32> -> vector<104x128xf32>
    %c0_3 = arith.constant 0 : index
    %c0_4 = arith.constant 0 : index
    %4 = vector.load %arg3[%c0_3, %c0_4] : memref<1x128xf32, #tpu.memory_space<vmem>>, vector<1x128xf32>
    %5 = vector.broadcast %4 : vector<1x128xf32> to vector<104x128xf32>
    %6 = arith.addf %3, %5 : vector<104x128xf32>
    %cst_5 = arith.constant 0.000000e+00 : f32
    %7 = vector.broadcast %cst_5 : f32 to vector<104x128xf32>
    %8 = arith.maximumf %6, %7 : vector<104x128xf32>
    %9 = arith.truncf %8 : vector<104x128xf32> to vector<104x128xbf16>
    %c0_6 = arith.constant 0 : index
    %c0_7 = arith.constant 0 : index
    %10 = vector.load %arg4[%c0_6, %c0_7] : memref<128x128xbf16, #tpu.memory_space<vmem>>, vector<128x128xbf16>
    %cst_8 = arith.constant dense<0.000000e+00> : vector<104x128xf32>
    %11 = tpu.matmul %9, %10, %cst_8 {dimension_numbers = #tpu.dot_dimension_numbers<[1], [0], [0], [1], [0, 0, 1, 1], [], []>} : vector<104x128xbf16>, vector<128x128xbf16>, vector<104x128xf32> -> vector<104x128xf32>
    %c0_9 = arith.constant 0 : index
    %c0_10 = arith.constant 0 : index
    %12 = vector.load %arg5[%c0_9, %c0_10] : memref<3x128xf32, #tpu.memory_space<vmem>>, vector<1x128xf32>
    %13 = vector.broadcast %12 : vector<1x128xf32> to vector<104x128xf32>
    %14 = arith.addf %11, %13 : vector<104x128xf32>
    %15 = tpu.iota {dimensions = array<i32: 1>} : vector<104x128xi32>
    %c4_i32 = arith.constant 4 : i32
    %16 = vector.broadcast %c4_i32 : i32 to vector<104x128xi32>
    %17 = arith.cmpi slt, %15, %16 : vector<104x128xi32>
    %cst_11 = arith.constant 0.000000e+00 : f32
    %18 = vector.broadcast %cst_11 : f32 to vector<104x128xf32>
    %19 = arith.select %17, %14, %18 : vector<104x128xi1>, vector<104x128xf32>
    %cst_12 = arith.constant dense<0.000000e+00> : vector<104xf32>
    %20 = vector.multi_reduction <add>, %19, %cst_12 [1] : vector<104x128xf32> to vector<104xf32>
    %21 = vector.shape_cast %20 : vector<104xf32> to vector<104x1xf32>
    %cst_13 = arith.constant 2.500000e-01 : f32
    %22 = vector.broadcast %cst_13 : f32 to vector<104x1xf32>
    %23 = arith.mulf %21, %22 : vector<104x1xf32>
    %24 = vector.broadcast %23 : vector<104x1xf32> to vector<104x128xf32>
    %25 = arith.subf %14, %24 : vector<104x128xf32>
    %cst_14 = arith.constant 0.000000e+00 : f32
    %26 = vector.broadcast %cst_14 : f32 to vector<104x128xf32>
    %27 = arith.select %17, %25, %26 : vector<104x128xi1>, vector<104x128xf32>
    %28 = arith.mulf %27, %27 : vector<104x128xf32>
    %cst_15 = arith.constant dense<0.000000e+00> : vector<104xf32>
    %29 = vector.multi_reduction <add>, %28, %cst_15 [1] : vector<104x128xf32> to vector<104xf32>
    %30 = vector.shape_cast %29 : vector<104xf32> to vector<104x1xf32>
    %cst_16 = arith.constant 2.500000e-01 : f32
    %31 = vector.broadcast %cst_16 : f32 to vector<104x1xf32>
    %32 = arith.mulf %30, %31 : vector<104x1xf32>
    %cst_17 = arith.constant 9.99999974E-6 : f32
    %33 = vector.broadcast %cst_17 : f32 to vector<104x1xf32>
    %34 = arith.addf %32, %33 : vector<104x1xf32>
    %35 = math.rsqrt %34 : vector<104x1xf32>
    %36 = vector.broadcast %35 : vector<104x1xf32> to vector<104x128xf32>
    %37 = arith.mulf %27, %36 : vector<104x128xf32>
    %c1 = arith.constant 1 : index
    %c0_18 = arith.constant 0 : index
    %38 = vector.load %arg5[%c1, %c0_18] : memref<3x128xf32, #tpu.memory_space<vmem>>, vector<1x128xf32>
    %39 = vector.broadcast %38 : vector<1x128xf32> to vector<104x128xf32>
    %40 = arith.mulf %37, %39 : vector<104x128xf32>
    %c2 = arith.constant 2 : index
    %c0_19 = arith.constant 0 : index
    %41 = vector.load %arg5[%c2, %c0_19] : memref<3x128xf32, #tpu.memory_space<vmem>>, vector<1x128xf32>
    %42 = vector.broadcast %41 : vector<1x128xf32> to vector<104x128xf32>
    %43 = arith.addf %40, %42 : vector<104x128xf32>
    %c0_20 = arith.constant 0 : index
    %c0_21 = arith.constant 0 : index
    %44 = vector.load %arg6[%c0_20, %c0_21] : memref<104x128xf32, #tpu.memory_space<vmem>>, vector<104x128xf32>
    tpu.vector_store %arg6[%c0_20, %c0_21], %43 {strides = array<i32>} : memref<104x128xf32, #tpu.memory_space<vmem>>, vector<104x128xf32>,
    return
  }
  func.func @transform_0(%arg0: i32) -> (i32, i32) {
    %c0_i32 = arith.constant 0 : i32
    %c0_i32_0 = arith.constant 0 : i32
    return %arg0, %c0_i32 : i32, i32
  }
  func.func @transform_1(%arg0: i32) -> (i32, i32) {
    %c0_i32 = arith.constant 0 : i32
    %c0_i32_0 = arith.constant 0 : i32
    %c0_i32_1 = arith.constant 0 : i32
    return %c0_i32, %c0_i32_0 : i32, i32
  }
  func.func @transform_2(%arg0: i32) -> (i32, i32) {
    %c0_i32 = arith.constant 0 : i32
    %c0_i32_0 = arith.constant 0 : i32
    %c0_i32_1 = arith.constant 0 : i32
    return %c0_i32, %c0_i32_0 : i32, i32
  }
  func.func @transform_3(%arg0: i32) -> (i32, i32) {
    %c0_i32 = arith.constant 0 : i32
    %c0_i32_0 = arith.constant 0 : i32
    %c0_i32_1 = arith.constant 0 : i32
    return %c0_i32, %c0_i32_0 : i32, i32
  }
  func.func @transform_4(%arg0: i32) -> (i32, i32) {
    %c0_i32 = arith.constant 0 : i32
    %c0_i32_0 = arith.constant 0 : i32
    %c0_i32_1 = arith.constant 0 : i32
    return %c0_i32, %c0_i32_0 : i32, i32
  }
  func.func @transform_5(%arg0: i32) -> (i32, i32) {
    %c0_i32 = arith.constant 0 : i32
    %c0_i32_0 = arith.constant 0 : i32
    return %arg0, %c0_i32 : i32, i32
  }
}

</mosaic_0001>

<bundles_post_ra>
// kernel: tpu_custom_call.1
= control target key start
LH: loop header
LB: loop body
LE: loop exit
PB: predicated region body
PF: predicated region fallthrough
CT: control target
= control target key end

     0   :  { %10 = vsyncpa [#allocation3], 0  ;;  %s1236_s0 = inlined_call_operand.hbm [shape: f32[104,128], index: 0, kind: input, shape index: {}]   ;;  %s1237_s1 = inlined_call_operand.hbm [shape: bf16[128,128], index: 1, kind: input, shape index: {}]   ;;  %s1238_s2 = inlined_call_operand.vmem [shape: f32[1,128], index: 2, kind: input, shape index: {}]   ;;  %s1239_s3 = inlined_call_operand.hbm [shape: bf16[128,128], index: 3, kind: input, shape index: {}]   ;;  %s1240_s4 = inlined_call_operand.hbm [shape: f32[3,128], index: 4, kind: input, shape index: {}]   ;;  %s1241_s5 = inlined_call_operand.hbm [shape: f32[104,128], index: 5, kind: output, shape index: {}]  }
   0x1   :  { %11 = vsyncpa [#allocation6], 0 }
   0x2   :  { %12 = vsyncpa [#allocation9], 0  ;;  %s31_s20 = sshll.u32 %s1237_s1, 4  ;;  %s32_s20 = int_to_ptr.hbm [resolvable:$true] %s31_s20 }
   0x3   :  { %13 = vsyncpa [#allocation4], 0  ;;  %s958_s21 = smov [#allocation5]   ;;  %s18_s25 = sshll.u32 %s1236_s0, 4  ;;  %s19_s25 = int_to_ptr.hbm [resolvable:$true] %s18_s25 }
   0x4   :  { %s33_s22 = sshll.u32 %s958_s21, 4  ;;  %s959_s26 = smov 64   ;;  %s34_s22 = int_to_ptr.vmem [resolvable:$true] %s33_s22 }
   0x5   :  { %s960_s27 = smov 4   ;;  %s961_s28 = smov [#allocation2]  }
   0x6   :  { %39 = dma.hbm_to_vmem [thread:$0]  %s32_s20, 1024, %s34_s22, [#allocation6], %s959_s26, %s959_s26, %s960_s27  }
   0x7   :  { %s20_s29 = sshll.u32 %s961_s28, 4  ;;  %s962_s30 = smov 128   ;;  %s21_s29 = int_to_ptr.vmem [resolvable:$true] %s20_s29 }
   0x8   :  { %s963_s6 = smov 8   ;;  %s46_s8 = sshll.u32 %s1239_s3, 4  ;;  %s47_s8 = int_to_ptr.hbm [resolvable:$true] %s46_s8 }
   0x9   :  { %26 = dma.hbm_to_vmem [thread:$0]  %s19_s25, 1664, %s21_s29, [#allocation3], %s962_s30, %s962_s30, %s963_s6  }
   0xa   :  { %s964_s9 = smov [#allocation7]   ;;  %s60_s12 = sshll.u32 %s1240_s4, 4  ;;  %s61_s12 = int_to_ptr.hbm [resolvable:$true] %s60_s12 }
   0xb   :  { %s48_s0 = sshll.u32 %s964_s9, 4  ;;  %s965_s13 = smov [#allocation8]   ;;  %s49_s0 = int_to_ptr.vmem [resolvable:$true] %s48_s0 }
   0xc   :  { %54 = dma.hbm_to_vmem [thread:$0]  %s47_s8, 1024, %s49_s0, [#allocation6], %s959_s26, %s959_s26, %s960_s27  }
   0xd   :  { %s62_s14 = sshll.u32 %s965_s13, 4  ;;  %s63_s14 = int_to_ptr.vmem [resolvable:$true] %s62_s14 }
   0xe   :  { %65 = dma.hbm_to_vmem [thread:$0]  %s61_s12, 64, %s63_s14, [#allocation9]  }
   0xf   :  { %950 = dma.done.wait [#allocation3], 1664  }
  0x10   :  { %951 = vsyncadd [#allocation3], 4294965632 }
  0x11   :  { %952 = dma.done.wait [#allocation6], 2048  }
  0x12   :  { %953 = vsyncadd [#allocation6], 4294965248 }
  0x13   :  { %954 = dma.done.wait [#allocation9], 64  }
  0x14   :  { %955 = vsyncadd [#allocation9], 4294967232  ;;  %v766_v0 = vld [vmem:[#allocation5 + $0x38] sm:$0xff]  ;;  %v765_v1 = vld [vmem:[#allocation5 + $0x30] sm:$0xff]  ;;  %s680_s18 = sshll.u32 %s1241_s5, 4  ;;  %s681_s18 = int_to_ptr.hbm [resolvable:$true] %s680_s18 }
  0x15   :  { %170 = vmatpush.bf16.msra.mxu0 %v766_v0  ;;  %775 = vmatpush.bf16.msra.mxu2 %v766_v0  ;;  %v764_v2 = vld [vmem:[#allocation5 + $0x28] sm:$0xff]  ;;  %v763_v3 = vld [vmem:[#allocation5 + $0x20] sm:$0xff]  ;;  %v762_v4 = vld [vmem:[#allocation5 + $0x18] sm:$0xff] }
  0x16   :  { %v761_v5 = vld [vmem:[#allocation5 + $0x10] sm:$0xff]  ;;  %v760_v6 = vld [vmem:[#allocation5 + $0x8] sm:$0xff]  ;;  %v759_v7 = vld [vmem:[#allocation5] sm:$0xff] }
  0x17   :  { %v82_v8 = vld [vmem:[#allocation2] sm:$0xff]  ;;  %v83_v9 = vld [vmem:[#allocation2 + $0x8] sm:$0xff]  ;;  %v88_v10 = vld [vmem:[#allocation2 + $0x30] sm:$0xff] }
  0x18   :  { %v89_v11 = vld [vmem:[#allocation2 + $0x38] sm:$0xff]  ;;  %v95_v12 = vpack.c.bf16 %v83_v9, %v82_v8  ;;  %v84_v14 = vld [vmem:[#allocation2 + $0x10] sm:$0xff]  ;;  %v90_v16 = vld [vmem:[#allocation2 + $0x40] sm:$0xff] }
  0x19   :  { %171 = vmatpush.bf16.msra.mxu0 %v765_v1  ;;  %776 = vmatpush.bf16.msra.mxu2 %v765_v1  ;;  %v98_v13 = vpack.c.bf16 %v89_v11, %v88_v10  ;;  %v85_v15 = vld [vmem:[#allocation2 + $0x18] sm:$0xff]  ;;  %v91_v17 = vld [vmem:[#allocation2 + $0x48] sm:$0xff]  ;;  %v774_v20 = vld [vmem:[#allocation7 + $0x38] sm:$0xff] }
  0x1a   :  { %v96_v18 = vpack.c.bf16 %v85_v15, %v84_v14  ;;  %v99_v19 = vpack.c.bf16 %v91_v17, %v90_v16  ;;  %299 = vmatpush.bf16.msra.mxu1 %v774_v20  ;;  %v773_v21 = vld [vmem:[#allocation7 + $0x30] sm:$0xff]  ;;  %783 = vmatpush.bf16.msra.mxu3 %v774_v20  ;;  %v772_v22 = vld [vmem:[#allocation7 + $0x28] sm:$0xff]  ;;  %v86_v23 = vld [vmem:[#allocation2 + $0x20] sm:$0xff]  ;;  %v342_v20 = vlaneseq }
  0x1b   :  { %v87_v24 = vld [vmem:[#allocation2 + $0x28] sm:$0xff]  ;;  %v92_v25 = vld [vmem:[#allocation2 + $0x50] sm:$0xff]  ;;  %v93_v26 = vld [vmem:[#allocation2 + $0x58] sm:$0xff] }
  0x1c   :  { %v771_v27 = vld [vmem:[#allocation7 + $0x20] sm:$0xff]  ;;  %v97_v28 = vpack.c.bf16 %v87_v24, %v86_v23  ;;  %v100_v29 = vpack.c.bf16 %v93_v26, %v92_v25  ;;  %v94_v30 = vld [vmem:[#allocation2 + $0x60] sm:$0xff]  ;;  %v769_v33 = vld [vmem:[#allocation7 + $0x10] sm:$0xff] }
  0x1d   :  { %172 = vmatpush.bf16.msra.mxu0 %v764_v2  ;;  %777 = vmatpush.bf16.msra.mxu2 %v764_v2  ;;  %v101_v31 = vpack.c.bf16 %v94_v30, %v94_v30  ;;  %v770_v32 = vld [vmem:[#allocation7 + $0x18] sm:$0xff]  ;;  %v768_v34 = vld [vmem:[#allocation7 + $0x8] sm:$0xff]  ;;  %v767_v35 = vld [vmem:[#allocation7] sm:$0xff] }
  0x1e   :  { %300 = vmatpush.bf16.msra.mxu1 %v773_v21  ;;  %784 = vmatpush.bf16.msra.mxu3 %v773_v21  ;;  %v800_v37 = vld [vmem:[%s1238_s2] ss:$0 sm:$0xff]  ;;  %v1015_v21 = vand.u32 127, %v342_v20  ;;  %s966_s2 = smov [#allocation10]  }
  0x1f   :  { %s678_s15 = sshll.u32 %s966_s2, 4  ;;  %s679_s15 = int_to_ptr.vmem [resolvable:$true] %s678_s15 }
  0x20   :  { %vm344_vm0 = vcmp.lt.s32.totalorder %v1015_v21, 4 }
  0x21   :  { %173 = vmatpush.bf16.msra.mxu0 %v763_v3  ;;  %778 = vmatpush.bf16.msra.mxu2 %v763_v3 }
  0x22   :  { %301 = vmatpush.bf16.msra.mxu1 %v772_v22  ;;  %785 = vmatpush.bf16.msra.mxu3 %v772_v22  ;;  %v801_v22 = vld [vmem:[#allocation8] ss:$0 sm:$0xff] }
  0x25   :  { %174 = vmatpush.bf16.msra.mxu0 %v762_v4  ;;  %779 = vmatpush.bf16.msra.mxu2 %v762_v4 }
  0x26   :  { %302 = vmatpush.bf16.msra.mxu1 %v771_v27  ;;  %786 = vmatpush.bf16.msra.mxu3 %v771_v27 }
  0x29   :  { %175 = vmatpush.bf16.msra.mxu0 %v761_v5  ;;  %780 = vmatpush.bf16.msra.mxu2 %v761_v5 }
  0x2a   :  { %303 = vmatpush.bf16.msra.mxu1 %v770_v32  ;;  %787 = vmatpush.bf16.msra.mxu3 %v770_v32 }
  0x2d   :  { %176 = vmatpush.bf16.msra.mxu0 %v760_v6  ;;  %781 = vmatpush.bf16.msra.mxu2 %v760_v6 }
  0x2e   :  { %304 = vmatpush.bf16.msra.mxu1 %v769_v33  ;;  %788 = vmatpush.bf16.msra.mxu3 %v769_v33 }
  0x31   :  { %177 = vmatpush.bf16.msra.mxu0 %v759_v7  ;;  %782 = vmatpush.bf16.msra.mxu2 %v759_v7 }
  0x32   :  { %305 = vmatpush.bf16.msra.mxu1 %v768_v34  ;;  %789 = vmatpush.bf16.msra.mxu3 %v768_v34 }
  0x34   :  { %178 = vmatmul.bf16.vlgmr.msra.gmra.mxu0 %v95_v12  ;;  %193 = vmatmul.bf16.vlgmr.msra.gmra.mxu2 %v98_v13 }
  0x36   :  { %306 = vmatpush.bf16.msra.mxu1 %v767_v35  ;;  %790 = vmatpush.bf16.msra.mxu3 %v767_v35 }
  0x44   :  { %183 = vmatmul.bf16.gmra.mxu0 %v96_v18  ;;  %198 = vmatmul.bf16.gmra.mxu2 %v99_v19 }
  0x54   :  { %188 = vmatmul.bf16.gmra.mxu0 %v97_v28  ;;  %203 = vmatmul.bf16.gmra.mxu2 %v100_v29 }
  0x64   :  { %208 = vmatmul.bf16.gmra.mxu2 %v101_v31 }
  0xb1   :  { %v179_v36 = vpop.f32.mrf.mxu0 }
  0xb2   :  { %v180_v39 = vadd.f32 %v800_v37, %v179_v36 }
  0xb4   :  { %v213_v42 = vmax.f32 %v180_v39, 0.0 }
  0xb7   :  { %v194_v38 = vpop.f32.mrf.mxu2 }
  0xb8   :  { %v195_v12 = vadd.f32 %v800_v37, %v194_v38 }
  0xb9   :  { %v181_v40 = vpop.f32.mrf.mxu0 }
  0xba   :  { %v182_v41 = vadd.f32 %v800_v37, %v181_v40  ;;  %v219_v15 = vmax.f32 %v195_v12, 0.0 }
  0xbc   :  { %v214_v43 = vmax.f32 %v182_v41, 0.0 }
  0xbe   :  { %v226_v44 = vpack.c.bf16 %v214_v43, %v213_v42 }
  0xbf   :  { %v196_v45 = vpop.f32.mrf.mxu2 }
  0xc0   :  { %307 = vmatmul.bf16.vlgmr.msra.gmra.mxu1 %v226_v44  ;;  %v197_v10 = vadd.f32 %v800_v37, %v196_v45 }
  0xc1   :  { %v184_v46 = vpop.f32.mrf.mxu0 }
  0xc2   :  { %v185_v48 = vadd.f32 %v800_v37, %v184_v46  ;;  %v220_v13 = vmax.f32 %v197_v10, 0.0 }
  0xc4   :  { %v215_v51 = vmax.f32 %v185_v48, 0.0  ;;  %v229_v17 = vpack.c.bf16 %v220_v13, %v219_v15 }
  0xc7   :  { %v199_v47 = vpop.f32.mrf.mxu2 }
  0xc8   :  { %v200_v53 = vadd.f32 %v800_v37, %v199_v47 }
  0xc9   :  { %v186_v49 = vpop.f32.mrf.mxu0 }
  0xca   :  { %v187_v50 = vadd.f32 %v800_v37, %v186_v49  ;;  %v221_v58 = vmax.f32 %v200_v53, 0.0 }
  0xcc   :  { %v216_v52 = vmax.f32 %v187_v50, 0.0 }
  0xce   :  { %v227_v54 = vpack.c.bf16 %v216_v52, %v215_v51 }
  0xcf   :  { %v201_v55 = vpop.f32.mrf.mxu2 }
  0xd0   :  { %v202_v56 = vadd.f32 %v800_v37, %v201_v55  ;;  %312 = vmatmul.bf16.gmra.mxu1 %v227_v54 }
  0xd1   :  { %v189_v57 = vpop.f32.mrf.mxu0 }
  0xd2   :  { %v222_v59 = vmax.f32 %v202_v56, 0.0  ;;  %v190_v62 = vadd.f32 %v800_v37, %v189_v57 }
  0xd4   :  { %v230_v60 = vpack.c.bf16 %v222_v59, %v221_v58  ;;  %v217_v1 = vmax.f32 %v190_v62, 0.0 }
  0xd6   :  { %327 = vmatmul.bf16.vlgmr.msra.gmra.mxu3 %v230_v60 }
  0xd7   :  { %v204_v61 = vpop.f32.mrf.mxu2 }
  0xd8   :  { %v205_v3 = vadd.f32 %v800_v37, %v204_v61 }
  0xd9   :  { %v191_v63 = vpop.f32.mrf.mxu0 }
  0xda   :  { %v192_v0 = vadd.f32 %v800_v37, %v191_v63  ;;  %v223_v7 = vmax.f32 %v205_v3, 0.0 }
  0xdc   :  { %v218_v2 = vmax.f32 %v192_v0, 0.0 }
  0xde   :  { %v228_v4 = vpack.c.bf16 %v218_v2, %v217_v1 }
  0xdf   :  { %v206_v5 = vpop.f32.mrf.mxu2 }
  0xe0   :  { %v207_v6 = vadd.f32 %v800_v37, %v206_v5  ;;  %317 = vmatmul.bf16.gmra.mxu1 %v228_v4 }
  0xe2   :  { %v224_v8 = vmax.f32 %v207_v6, 0.0 }
  0xe4   :  { %v231_v9 = vpack.c.bf16 %v224_v8, %v223_v7 }
  0xe6   :  { %332 = vmatmul.bf16.gmra.mxu3 %v231_v9 }
  0xe7   :  { %v209_v11 = vpop.f32.mrf.mxu2 }
  0xe8   :  { %v210_v14 = vadd.f32 %v800_v37, %v209_v11 }
  0xea   :  { %v225_v16 = vmax.f32 %v210_v14, 0.0 }
  0xec   :  { %v232_v19 = vpack.c.bf16 %v225_v16, %v225_v16 }
  0xef   :  { %v211_v18 = vpop.f32.mrf.mxu2 }
  0xf0   :  { %322 = vmatmul.bf16.gmra.mxu1 %v229_v17 }
  0xf6   :  { %337 = vmatmul.bf16.gmra.mxu3 %v232_v19 }
 0x13d   :  { %v308_v23 = vpop.f32.mrf.mxu1 }
 0x13e   :  { %v309_v24 = vadd.f32 %v801_v22, %v308_v23 }
 0x140   :  { %v345_v25 = vsel %vm344_vm0, %v309_v24, 0.0 }
 0x141   :  { %358 = vadd.xlane.f32.xlu0 %v345_v25 }
 0x145   :  { %v310_v26 = vpop.f32.mrf.mxu1 }
 0x146   :  { %v311_v27 = vadd.f32 %v801_v22, %v310_v26 }
 0x148   :  { %v346_v28 = vsel %vm344_vm0, %v311_v27, 0.0 }
 0x149   :  { %360 = vadd.xlane.f32.xlu0 %v346_v28 }
 0x14d   :  { %v313_v29 = vpop.f32.mrf.mxu1 }
 0x14e   :  { %v314_v30 = vadd.f32 %v801_v22, %v313_v29 }
 0x150   :  { %v347_v31 = vsel %vm344_vm0, %v314_v30, 0.0 }
 0x151   :  { %362 = vadd.xlane.f32.xlu1 %v347_v31 }
 0x155   :  { %v315_v32 = vpop.f32.mrf.mxu1 }
 0x156   :  { %v1024_v33 = vadd.f32 %v801_v22, %v315_v32 }
 0x158   :  { %v348_v34 = vsel %vm344_vm0, %v1024_v33, 0.0 }
 0x159   :  { %v328_v35 = vpop.f32.mrf.mxu3  ;;  %364 = vadd.xlane.f32.xlu1 %v348_v34 }
 0x15a   :  { %v1029_v36 = vadd.f32 %v801_v22, %v328_v35 }
 0x15c   :  { %v353_v37 = vsel %vm344_vm0, %v1029_v36, 0.0 }
 0x15d   :  { %374 = vadd.xlane.f32.xlu2 %v353_v37  ;;  %v318_v38 = vpop.f32.mrf.mxu1 }
 0x15e   :  { %v1034_v39 = vadd.f32 %v801_v22, %v318_v38 }
 0x160   :  { %v349_v42 = vsel %vm344_vm0, %v1034_v39, 0.0 }
 0x161   :  { %v330_v40 = vpop.f32.mrf.mxu3 }
 0x162   :  { %v1036_v41 = vadd.f32 %v801_v22, %v330_v40 }
 0x164   :  { %v354_v43 = vsel %vm344_vm0, %v1036_v41, 0.0 }
 0x165   :  { %v320_v44 = vpop.f32.mrf.mxu1  ;;  %366 = vadd.xlane.f32.xlu2 %v349_v42  ;;  %376 = vadd.xlane.f32.xlu0 %v354_v43 }
 0x166   :  { %v1044_v45 = vadd.f32 %v801_v22, %v320_v44 }
 0x168   :  { %v350_v47 = vsel %vm344_vm0, %v1044_v45, 0.0 }
 0x169   :  { %v333_v46 = vpop.f32.mrf.mxu3 }
 0x16a   :  { %v1066_v59 = vadd.f32 %v801_v22, %v333_v46 }
 0x16c   :  { %v355_v61 = vsel %vm344_vm0, %v1066_v59, 0.0 }
 0x16d   :  { %v323_v48 = vpop.f32.mrf.mxu1  ;;  %368 = vadd.xlane.f32.xlu2 %v350_v47 }
 0x16e   :  { %v1049_v49 = vadd.f32 %v801_v22, %v323_v48 }
 0x170   :  { %v351_v50 = vsel %vm344_vm0, %v1049_v49, 0.0 }
 0x171   :  { %v335_v51 = vpop.f32.mrf.mxu3  ;;  %370 = vadd.xlane.f32.xlu0 %v351_v50 }
 0x172   :  { %v1054_v52 = vadd.f32 %v801_v22, %v335_v51 }
 0x174   :  { %v356_v53 = vsel %vm344_vm0, %v1054_v52, 0.0 }
 0x175   :  { %v325_v54 = vpop.f32.mrf.mxu1  ;;  %380 = vadd.xlane.f32.xlu2 %v356_v53 }
 0x176   :  { %v1059_v55 = vadd.f32 %v801_v22, %v325_v54 }
 0x178   :  { %v352_v56 = vsel %vm344_vm0, %v1059_v55, 0.0 }
 0x179   :  { %v338_v57 = vpop.f32.mrf.mxu3  ;;  %372 = vadd.xlane.f32.xlu1 %v352_v56 }
 0x17a   :  { %v1064_v58 = vadd.f32 %v801_v22, %v338_v57 }
 0x17c   :  { %v357_v60 = vsel %vm344_vm0, %v1064_v58, 0.0 }
 0x17d   :  { %382 = vadd.xlane.f32.xlu0 %v357_v60 }
 0x181   :  { %v340_v62 = vpop.f32.mrf.mxu3  ;;  %378 = vadd.xlane.f32.xlu1 %v355_v61 }
 0x1b4   :  { %v359_v63 = vpop.xlane.xlu0 %358 }
 0x1b5   :  { %v384_v0 = vmul.f32 0.25, %v359_v63 }
 0x1b7   :  { %v397_v1 = vsub.f32 %v309_v24, %v384_v0 }
 0x1b9   :  { %v1076_v2 = vsel %vm344_vm0, %v397_v1, 0.0 }
 0x1ba   :  { %v423_v3 = vmul.f32 %v1076_v2, %v1076_v2 }
 0x1bc   :  { %436 = vadd.xlane.f32.xlu1 %v423_v3  ;;  %v361_v4 = vpop.xlane.xlu0 %360 }
 0x1bd   :  { %v385_v5 = vmul.f32 0.25, %v361_v4 }
 0x1bf   :  { %v398_v6 = vsub.f32 %v311_v27, %v385_v5 }
 0x1c1   :  { %v1082_v7 = vsel %vm344_vm0, %v398_v6, 0.0 }
 0x1c2   :  { %v424_v8 = vmul.f32 %v1082_v7, %v1082_v7 }
 0x1c4   :  { %v363_v9 = vpop.xlane.xlu1 %362  ;;  %438 = vadd.xlane.f32.xlu2 %v424_v8 }
 0x1c5   :  { %v386_v10 = vmul.f32 0.25, %v363_v9 }
 0x1c7   :  { %v399_v11 = vsub.f32 %v314_v30, %v386_v10 }
 0x1c9   :  { %v1088_v12 = vsel %vm344_vm0, %v399_v11, 0.0 }
 0x1ca   :  { %v425_v13 = vmul.f32 %v1088_v12, %v1088_v12 }
 0x1cc   :  { %v365_v14 = vpop.xlane.xlu1 %364  ;;  %440 = vadd.xlane.f32.xlu0 %v425_v13 }
 0x1cd   :  { %v387_v15 = vmul.f32 0.25, %v365_v14 }
 0x1cf   :  { %v400_v16 = vsub.f32 %v1024_v33, %v387_v15 }
 0x1d0   :  { %v375_v17 = vpop.xlane.xlu2 %374 }
 0x1d1   :  { %v392_v18 = vmul.f32 0.25, %v375_v17  ;;  %v1095_v19 = vsel %vm344_vm0, %v400_v16, 0.0 }
 0x1d2   :  { %v426_v20 = vmul.f32 %v1095_v19, %v1095_v19 }
 0x1d3   :  { %v405_v22 = vsub.f32 %v1029_v36, %v392_v18 }
 0x1d4   :  { %442 = vadd.xlane.f32.xlu1 %v426_v20 }
 0x1d5   :  { %v1102_v23 = vsel %vm344_vm0, %v405_v22, 0.0  ;;  %v1162_v22 = vld [vmem:[#allocation8 + $0x1] ss:$0 sm:$0xff] }
 0x1d6   :  { %v431_v24 = vmul.f32 %v1102_v23, %v1102_v23 }
 0x1d8   :  { %v367_v25 = vpop.xlane.xlu2 %366  ;;  %452 = vadd.xlane.f32.xlu0 %v431_v24  ;;  %v377_v26 = vpop.xlane.xlu0 %376 }
 0x1d9   :  { %v388_v27 = vmul.f32 0.25, %v367_v25  ;;  %v393_v28 = vmul.f32 0.25, %v377_v26  ;;  %v1164_v26 = vld [vmem:[#allocation8 + $0x2] ss:$0 sm:$0xff] }
 0x1db   :  { %v401_v29 = vsub.f32 %v1034_v39, %v388_v27  ;;  %v406_v30 = vsub.f32 %v1036_v41, %v393_v28 }
 0x1dd   :  { %v1110_v31 = vsel %vm344_vm0, %v401_v29, 0.0  ;;  %v1114_v32 = vsel %vm344_vm0, %v406_v30, 0.0 }
 0x1de   :  { %v427_v33 = vmul.f32 %v1110_v31, %v1110_v31  ;;  %v432_v34 = vmul.f32 %v1114_v32, %v1114_v32 }
 0x1e0   :  { %v369_v35 = vpop.xlane.xlu2 %368  ;;  %444 = vadd.xlane.f32.xlu2 %v427_v33  ;;  %454 = vadd.xlane.f32.xlu1 %v432_v34 }
 0x1e1   :  { %v389_v36 = vmul.f32 0.25, %v369_v35 }
 0x1e3   :  { %v402_v37 = vsub.f32 %v1044_v45, %v389_v36 }
 0x1e4   :  { %v371_v38 = vpop.xlane.xlu0 %370 }
 0x1e5   :  { %v390_v39 = vmul.f32 0.25, %v371_v38  ;;  %v1123_v40 = vsel %vm344_vm0, %v402_v37, 0.0 }
 0x1e6   :  { %v428_v41 = vmul.f32 %v1123_v40, %v1123_v40 }
 0x1e7   :  { %v403_v42 = vsub.f32 %v1049_v49, %v390_v39 }
 0x1e8   :  { %v381_v43 = vpop.xlane.xlu2 %380  ;;  %446 = vadd.xlane.f32.xlu0 %v428_v41 }
 0x1e9   :  { %v395_v44 = vmul.f32 0.25, %v381_v43  ;;  %v1130_v46 = vsel %vm344_vm0, %v403_v42, 0.0 }
 0x1ea   :  { %v429_v45 = vmul.f32 %v1130_v46, %v1130_v46 }
 0x1eb   :  { %v408_v47 = vsub.f32 %v1054_v52, %v395_v44 }
 0x1ec   :  { %v373_v48 = vpop.xlane.xlu1 %372  ;;  %448 = vadd.xlane.f32.xlu1 %v429_v45 }
 0x1ed   :  { %v391_v50 = vmul.f32 0.25, %v373_v48  ;;  %v1137_v51 = vsel %vm344_vm0, %v408_v47, 0.0 }
 0x1ee   :  { %v434_v49 = vmul.f32 %v1137_v51, %v1137_v51 }
 0x1ef   :  { %v404_v53 = vsub.f32 %v1059_v55, %v391_v50 }
 0x1f0   :  { %458 = vadd.xlane.f32.xlu0 %v434_v49  ;;  %v383_v54 = vpop.xlane.xlu0 %382 }
 0x1f1   :  { %v396_v56 = vmul.f32 0.25, %v383_v54  ;;  %v1144_v57 = vsel %vm344_vm0, %v404_v53, 0.0 }
 0x1f2   :  { %v430_v52 = vmul.f32 %v1144_v57, %v1144_v57 }
 0x1f3   :  { %v409_v60 = vsub.f32 %v1064_v58, %v396_v56 }
 0x1f4   :  { %v379_v61 = vpop.xlane.xlu1 %378  ;;  %450 = vadd.xlane.f32.xlu2 %v430_v52 }
 0x1f5   :  { %v394_v62 = vmul.f32 0.25, %v379_v61  ;;  %v1151_v63 = vsel %vm344_vm0, %v409_v60, 0.0 }
 0x1f6   :  { %v435_v55 = vmul.f32 %v1151_v63, %v1151_v63 }
 0x1f7   :  { %v407_v0 = vsub.f32 %v1066_v59, %v394_v62 }
 0x1f8   :  { %460 = vadd.xlane.f32.xlu1 %v435_v55 }
 0x1f9   :  { %v1158_v1 = vsel %vm344_vm0, %v407_v0, 0.0 }
 0x1fa   :  { %v433_v58 = vmul.f32 %v1158_v1, %v1158_v1 }
 0x1fc   :  { %456 = vadd.xlane.f32.xlu2 %v433_v58 }
 0x22f   :  { %v437_v3 = vpop.xlane.xlu1 %436 }
 0x230   :  { %v462_v4 = vmul.f32 0.25, %v437_v3 }
 0x232   :  { %v475_v5 = vadd.f32 1e-05, %v462_v4 }
 0x234   :  { %804 = vrsqrt.f32 %v475_v5  ;;  %vm494_vm2 = vweird.f32 %v475_v5 }
 0x237   :  { %v439_v6 = vpop.xlane.xlu2 %438 }
 0x238   :  { %v463_v8 = vmul.f32 0.25, %v439_v6 }
 0x23a   :  { %v805_v9 = vpop.eup %804  ;;  %v476_v10 = vadd.f32 1e-05, %v463_v8 }
 0x23b   :  { %v489_v11 = vmul.f32 %v805_v9, %v475_v5  ;;  %vm495_vm1 = vweird.f32 %v805_v9 }
 0x23c   :  { %806 = vrsqrt.f32 %v476_v10  ;;  %vm496_vm3 = vmor %vm494_vm2, %vm495_vm1  ;;  %vm504_vm5 = vweird.f32 %v476_v10 }
 0x23d   :  { %v490_v59 = vmul.f32 %v805_v9, %v489_v11 }
 0x23f   :  { %v491_v13 = vmul.f32 0.5, %v490_v59  ;;  %v441_v14 = vpop.xlane.xlu0 %440 }
 0x240   :  { %v464_v21 = vmul.f32 0.25, %v441_v14 }
 0x241   :  { %v492_v15 = vsub.f32 1.5, %v491_v13 }
 0x242   :  { %v807_v16 = vpop.eup %806  ;;  %v477_v17 = vadd.f32 1e-05, %v464_v21 }
 0x243   :  { %v493_v18 = vmul.f32 %v805_v9, %v492_v15  ;;  %v499_v20 = vmul.f32 %v807_v16, %v476_v10  ;;  %vm505_vm4 = vweird.f32 %v807_v16 }
 0x244   :  { %808 = vrsqrt.f32 %v477_v17  ;;  %vm506_vm6 = vmor %vm504_vm5, %vm505_vm4  ;;  %vm514_vm8 = vweird.f32 %v477_v17 }
 0x245   :  { %v497_v24 = vsel %vm496_vm3, %v805_v9, %v493_v18  ;;  %v500_v25 = vmul.f32 %v807_v16, %v499_v20 }
 0x246   :  { %v618_v27 = vmul.f32 %v497_v24, %v1076_v2 }
 0x247   :  { %v501_v28 = vmul.f32 0.5, %v500_v25  ;;  %v443_v29 = vpop.xlane.xlu1 %442 }
 0x248   :  { %v633_v30 = vmul.f32 %v1162_v22, %v618_v27  ;;  %v465_v33 = vmul.f32 0.25, %v443_v29 }
 0x249   :  { %v502_v34 = vsub.f32 1.5, %v501_v28 }
 0x24a   :  { %v809_v35 = vpop.eup %808  ;;  %v648_v36 = vadd.f32 %v1164_v26, %v633_v30  ;;  %v478_v37 = vadd.f32 1e-05, %v465_v33 }
 0x24b   :  { %v503_v38 = vmul.f32 %v807_v16, %v502_v34  ;;  %v509_v39 = vmul.f32 %v809_v35, %v477_v17  ;;  %v453_v41 = vpop.xlane.xlu0 %452  ;;  %vm515_vm7 = vweird.f32 %v809_v35 }
 0x24c   :  { %661 = vst [vmem:[#allocation10] sm:$0xff] %v648_v36  ;;  %810 = vrsqrt.f32 %v478_v37  ;;  %v470_v42 = vmul.f32 0.25, %v453_v41  ;;  %vm516_vm9 = vmor %vm514_vm8, %vm515_vm7  ;;  %vm524_vm11 = vweird.f32 %v478_v37 }
 0x24d   :  { %v507_v2 = vsel %vm506_vm6, %v807_v16, %v503_v38  ;;  %v510_v43 = vmul.f32 %v809_v35, %v509_v39 }
 0x24e   :  { %v619_v44 = vmul.f32 %v507_v2, %v1082_v7  ;;  %v483_v45 = vadd.f32 1e-05, %v470_v42 }
 0x24f   :  { %v511_v47 = vmul.f32 0.5, %v510_v43 }
 0x250   :  { %v634_v48 = vmul.f32 %v1162_v22, %v619_v44  ;;  %812 = vrsqrt.f32 %v483_v45  ;;  %vm574_vm14 = vweird.f32 %v483_v45 }
 0x251   :  { %v512_v50 = vsub.f32 1.5, %v511_v47 }
 0x252   :  { %v811_v49 = vpop.eup %810  ;;  %v649_v53 = vadd.f32 %v1164_v26, %v634_v48 }
 0x253   :  { %v513_v54 = vmul.f32 %v809_v35, %v512_v50  ;;  %v519_v56 = vmul.f32 %v811_v49, %v478_v37  ;;  %v445_v52 = vpop.xlane.xlu2 %444  ;;  %v455_v60 = vpop.xlane.xlu1 %454  ;;  %vm525_vm10 = vweird.f32 %v811_v49 }
 0x254   :  { %662 = vst [vmem:[#allocation10 + $0x8] sm:$0xff] %v649_v53  ;;  %v466_v61 = vmul.f32 0.25, %v445_v52  ;;  %v471_v62 = vmul.f32 0.25, %v455_v60  ;;  %vm526_vm12 = vmor %vm524_vm11, %vm525_vm10 }
 0x255   :  { %v517_v7 = vsel %vm516_vm9, %v809_v35, %v513_v54  ;;  %v520_v55 = vmul.f32 %v811_v49, %v519_v56 }
 0x256   :  { %v813_v0 = vpop.eup %812  ;;  %v620_v58 = vmul.f32 %v517_v7, %v1088_v12  ;;  %v479_v3 = vadd.f32 1e-05, %v466_v61  ;;  %v1173_v4 = vadd.f32 1e-05, %v471_v62 }
 0x257   :  { %v521_v5 = vmul.f32 0.5, %v520_v55  ;;  %v569_v6 = vmul.f32 %v813_v0, %v483_v45  ;;  %vm575_vm13 = vweird.f32 %v813_v0 }
 0x258   :  { %v635_v8 = vmul.f32 %v1162_v22, %v620_v58  ;;  %814 = vrsqrt.f32 %v479_v3  ;;  %vm576_vm15 = vmor %vm574_vm14, %vm575_vm13  ;;  %vm534_vm2 = vweird.f32 %v479_v3  ;;  %vm584_vm4 = vweird.f32 %v1173_v4 }
 0x259   :  { %v522_v9 = vsub.f32 1.5, %v521_v5  ;;  %v570_v10 = vmul.f32 %v813_v0, %v569_v6  ;;  %816 = vrsqrt.f32 %v1173_v4 }
 0x25a   :  { %v650_v11 = vadd.f32 %v1164_v26, %v635_v8 }
 0x25b   :  { %v523_v59 = vmul.f32 %v811_v49, %v522_v9  ;;  %v571_v13 = vmul.f32 0.5, %v570_v10  ;;  %v447_v14 = vpop.xlane.xlu0 %446 }
 0x25c   :  { %663 = vst [vmem:[#allocation10 + $0x10] sm:$0xff] %v650_v11  ;;  %v467_v12 = vmul.f32 0.25, %v447_v14 }
 0x25d   :  { %v527_v21 = vsel %vm526_vm12, %v811_v49, %v523_v59  ;;  %v572_v15 = vsub.f32 1.5, %v571_v13 }
 0x25e   :  { %v815_v16 = vpop.eup %814  ;;  %v621_v17 = vmul.f32 %v527_v21, %v1095_v19  ;;  %v1179_v18 = vadd.f32 1e-05, %v467_v12 }
 0x25f   :  { %v817_v20 = vpop.eup %816  ;;  %v573_v24 = vmul.f32 %v813_v0, %v572_v15  ;;  %v529_v25 = vmul.f32 %v815_v16, %v479_v3  ;;  %v449_v27 = vpop.xlane.xlu1 %448  ;;  %vm535_vm0 = vweird.f32 %v815_v16 }
 0x260   :  { %v636_v28 = vmul.f32 %v1162_v22, %v621_v17  ;;  %v579_v29 = vmul.f32 %v817_v20, %v1173_v4  ;;  %818 = vrsqrt.f32 %v1179_v18  ;;  %v468_v34 = vmul.f32 0.25, %v449_v27  ;;  %vm536_vm3 = vmor %vm534_vm2, %vm535_vm0 }
 0x261   :  { %v577_v30 = vsel %vm576_vm15, %v813_v0, %v573_v24  ;;  %v530_v33 = vmul.f32 %v815_v16, %v529_v25  ;;  %vm585_vm1 = vweird.f32 %v817_v20  ;;  %vm544_vm7 = vweird.f32 %v1179_v18 }
 0x262   :  { %v651_v35 = vadd.f32 %v1164_v26, %v636_v28  ;;  %v626_v19 = vmul.f32 %v577_v30, %v1102_v23  ;;  %v580_v36 = vmul.f32 %v817_v20, %v579_v29  ;;  %v1186_v38 = vadd.f32 1e-05, %v468_v34  ;;  %vm586_vm5 = vmor %vm584_vm4, %vm585_vm1 }
 0x263   :  { %v531_v37 = vmul.f32 0.5, %v530_v33  ;;  %v459_v39 = vpop.xlane.xlu0 %458 }
 0x264   :  { %664 = vst [vmem:[#allocation10 + $0x18] sm:$0xff] %v651_v35  ;;  %v641_v41 = vmul.f32 %v1162_v22, %v626_v19  ;;  %v581_v42 = vmul.f32 0.5, %v580_v36  ;;  %v473_v2 = vmul.f32 0.25, %v459_v39  ;;  %820 = vrsqrt.f32 %v1186_v38 }
 0x265   :  { %v532_v43 = vsub.f32 1.5, %v531_v37  ;;  %vm554_vm10 = vweird.f32 %v1186_v38 }
 0x266   :  { %v819_v44 = vpop.eup %818  ;;  %v656_v45 = vadd.f32 %v1164_v26, %v641_v41  ;;  %v582_v47 = vsub.f32 1.5, %v581_v42  ;;  %v1191_v23 = vadd.f32 1e-05, %v473_v2 }
 0x267   :  { %v533_v48 = vmul.f32 %v815_v16, %v532_v43  ;;  %v539_v50 = vmul.f32 %v819_v44, %v1179_v18  ;;  %v451_v49 = vpop.xlane.xlu2 %450  ;;  %vm545_vm6 = vweird.f32 %v819_v44 }
 0x268   :  { %669 = vst [vmem:[#allocation10 + $0x40] sm:$0xff] %v656_v45  ;;  %v583_v53 = vmul.f32 %v817_v20, %v582_v47  ;;  %822 = vrsqrt.f32 %v1191_v23  ;;  %v469_v54 = vmul.f32 0.25, %v451_v49  ;;  %vm546_vm8 = vmor %vm544_vm7, %vm545_vm6  ;;  %vm604_vm13 = vweird.f32 %v1191_v23 }
 0x269   :  { %v537_v56 = vsel %vm536_vm3, %v815_v16, %v533_v48  ;;  %v540_v52 = vmul.f32 %v819_v44, %v539_v50 }
 0x26a   :  { %v622_v60 = vmul.f32 %v537_v56, %v1110_v31  ;;  %v587_v61 = vsel %vm586_vm5, %v817_v20, %v583_v53  ;;  %v1197_v62 = vadd.f32 1e-05, %v469_v54  ;;  %v821_v7 = vpop.eup %820 }
 0x26b   :  { %v627_v55 = vmul.f32 %v587_v61, %v1114_v32  ;;  %v541_v0 = vmul.f32 0.5, %v540_v52  ;;  %v461_v58 = vpop.xlane.xlu1 %460  ;;  %v549_v4 = vmul.f32 %v821_v7, %v1186_v38  ;;  %vm555_vm9 = vweird.f32 %v821_v7 }
 0x26c   :  { %v637_v3 = vmul.f32 %v1162_v22, %v622_v60  ;;  %824 = vrsqrt.f32 %v1197_v62  ;;  %v474_v8 = vmul.f32 0.25, %v461_v58  ;;  %vm556_vm11 = vmor %vm554_vm10, %vm555_vm9  ;;  %vm564_vm0 = vweird.f32 %v1197_v62 }
 0x26d   :  { %v642_v5 = vmul.f32 %v1162_v22, %v627_v55  ;;  %v542_v6 = vsub.f32 1.5, %v541_v0  ;;  %v550_v10 = vmul.f32 %v821_v7, %v549_v4 }
 0x26e   :  { %v823_v31 = vpop.eup %822  ;;  %v652_v9 = vadd.f32 %v1164_v26, %v637_v3  ;;  %v487_v12 = vadd.f32 1e-05, %v474_v8 }
 0x26f   :  { %v657_v11 = vadd.f32 %v1164_v26, %v642_v5  ;;  %v543_v32 = vmul.f32 %v819_v44, %v542_v6  ;;  %v599_v59 = vmul.f32 %v823_v31, %v1191_v23  ;;  %v457_v13 = vpop.xlane.xlu2 %456  ;;  %v551_v14 = vmul.f32 0.5, %v550_v10 }
 0x270   :  { %665 = vst [vmem:[#allocation10 + $0x20] sm:$0xff] %v652_v9  ;;  %v472_v21 = vmul.f32 0.25, %v457_v13  ;;  %826 = vrsqrt.f32 %v487_v12  ;;  %vm605_vm12 = vweird.f32 %v823_v31  ;;  %vm614_vm3 = vweird.f32 %v487_v12 }
 0x271   :  { %670 = vst [vmem:[#allocation10 + $0x48] sm:$0xff] %v657_v11  ;;  %v547_v15 = vsel %vm546_vm8, %v819_v44, %v543_v32  ;;  %v600_v16 = vmul.f32 %v823_v31, %v599_v59  ;;  %v552_v24 = vsub.f32 1.5, %v551_v14  ;;  %vm606_vm14 = vmor %vm604_vm13, %vm605_vm12 }
 0x272   :  { %v825_v17 = vpop.eup %824  ;;  %v623_v20 = vmul.f32 %v547_v15, %v1123_v40  ;;  %v485_v27 = vadd.f32 1e-05, %v472_v21 }
 0x273   :  { %v601_v25 = vmul.f32 0.5, %v600_v16  ;;  %v559_v18 = vmul.f32 %v825_v17, %v1197_v62  ;;  %v553_v29 = vmul.f32 %v821_v7, %v552_v24  ;;  %vm565_vm15 = vweird.f32 %v825_v17 }
 0x274   :  { %v638_v28 = vmul.f32 %v1162_v22, %v623_v20  ;;  %828 = vrsqrt.f32 %v485_v27  ;;  %vm566_vm1 = vmor %vm564_vm0, %vm565_vm15  ;;  %vm594_vm6 = vweird.f32 %v485_v27 }
 0x275   :  { %v602_v30 = vsub.f32 1.5, %v601_v25  ;;  %v560_v33 = vmul.f32 %v825_v17, %v559_v18  ;;  %v557_v40 = vsel %vm556_vm11, %v821_v7, %v553_v29 }
 0x276   :  { %v653_v34 = vadd.f32 %v1164_v26, %v638_v28  ;;  %v624_v35 = vmul.f32 %v557_v40, %v1130_v46  ;;  %v827_v37 = vpop.eup %826 }
 0x277   :  { %v603_v19 = vmul.f32 %v823_v31, %v602_v30  ;;  %v561_v36 = vmul.f32 0.5, %v560_v33  ;;  %v609_v42 = vmul.f32 %v827_v37, %v487_v12  ;;  %vm615_vm2 = vweird.f32 %v827_v37 }
 0x278   :  { %666 = vst [vmem:[#allocation10 + $0x28] sm:$0xff] %v653_v34  ;;  %v639_v38 = vmul.f32 %v1162_v22, %v624_v35  ;;  %vm616_vm4 = vmor %vm614_vm3, %vm615_vm2 }
 0x279   :  { %v607_v39 = vsel %vm606_vm14, %v823_v31, %v603_v19  ;;  %v562_v41 = vsub.f32 1.5, %v561_v36  ;;  %v610_v46 = vmul.f32 %v827_v37, %v609_v42 }
 0x27a   :  { %v629_v2 = vmul.f32 %v607_v39, %v1137_v51  ;;  %v829_v43 = vpop.eup %828  ;;  %v654_v44 = vadd.f32 %v1164_v26, %v639_v38 }
 0x27b   :  { %v563_v45 = vmul.f32 %v825_v17, %v562_v41  ;;  %v589_v23 = vmul.f32 %v829_v43, %v485_v27  ;;  %v611_v50 = vmul.f32 0.5, %v610_v46  ;;  %vm595_vm5 = vweird.f32 %v829_v43 }
 0x27c   :  { %v644_v47 = vmul.f32 %v1162_v22, %v629_v2  ;;  %667 = vst [vmem:[#allocation10 + $0x30] sm:$0xff] %v654_v44  ;;  %vm596_vm7 = vmor %vm594_vm6, %vm595_vm5 }
 0x27d   :  { %v567_v48 = vsel %vm566_vm1, %v825_v17, %v563_v45  ;;  %v590_v54 = vmul.f32 %v829_v43, %v589_v23  ;;  %v612_v51 = vsub.f32 1.5, %v611_v50 }
 0x27e   :  { %v659_v49 = vadd.f32 %v1164_v26, %v644_v47  ;;  %v625_v53 = vmul.f32 %v567_v48, %v1144_v57 }
 0x27f   :  { %v591_v52 = vmul.f32 0.5, %v590_v54  ;;  %v613_v60 = vmul.f32 %v827_v37, %v612_v51 }
 0x280   :  { %672 = vst [vmem:[#allocation10 + $0x58] sm:$0xff] %v659_v49  ;;  %v640_v56 = vmul.f32 %v1162_v22, %v625_v53 }
 0x281   :  { %v592_v62 = vsub.f32 1.5, %v591_v52  ;;  %v617_v7 = vsel %vm616_vm4, %v827_v37, %v613_v60 }
 0x282   :  { %v655_v61 = vadd.f32 %v1164_v26, %v640_v56  ;;  %v630_v55 = vmul.f32 %v617_v7, %v1151_v63 }
 0x283   :  { %v593_v0 = vmul.f32 %v829_v43, %v592_v62 }
 0x284   :  { %668 = vst [vmem:[#allocation10 + $0x38] sm:$0xff] %v655_v61  ;;  %v645_v57 = vmul.f32 %v1162_v22, %v630_v55 }
 0x285   :  { %v597_v58 = vsel %vm596_vm7, %v829_v43, %v593_v0 }
 0x286   :  { %v628_v3 = vmul.f32 %v597_v58, %v1158_v1  ;;  %v660_v4 = vadd.f32 %v1164_v26, %v645_v57 }
 0x288   :  { %v643_v5 = vmul.f32 %v1162_v22, %v628_v3  ;;  %673 = vst [vmem:[#allocation10 + $0x60] sm:$0xff] %v660_v4 }
 0x28a   :  { %v658_v63 = vadd.f32 %v1164_v26, %v643_v5 }
 0x28c   :  { %671 = vst [vmem:[#allocation10 + $0x50] sm:$0xff] %v658_v63 }
 0x28d   :  { %686 = dma.vmem_to_hbm [thread:$0]  %s679_s15, 1664, %s681_s18, [#allocation4], %s962_s30, %s962_s30, %s963_s6  }
 0x28e   :  { %956 = dma.done.wait [#allocation4], 1664  }
 0x28f   :  { %957 = vsyncadd [#allocation4], 4294965632 }
 0x290   :  { %691 = vsyncpa [#allocation3], 1 }
 0x291   :  { %692 = vsyncpa [#allocation6], 1 }
 0x292   :  { %693 = vsyncpa [#allocation9], 1 }
 0x293   :  { %694 = vsyncpa [#allocation4], 1 }

</bundles_post_ra>
